<compile_context>
chip_gen: v6e
topology: v6e:2x2x1
jax: 0.10.0
libtpu: 0.0.40
codegen_flags: <defaults>
</compile_context>

<pallas_src>
import jax
import jax.numpy as jnp
from jax.experimental import pallas as pl
from jax.experimental.pallas import tpu as pltpu


def _round_up(x, m):
    return ((x + m - 1) // m) * m


def _round_down(x, m):
    return (x // m) * m


def final_layer_kernel(x_ref, w_ref, b_ref, o_ref):
    # x_ref: (TR, H) row block
    # w_ref: (H, TN) gamma-folded weight (MXU operand dtype)
    # b_ref: (1, TN) beta-folded bias (f32)
    # o_ref: (TR, TN)
    x = x_ref[...].astype(jnp.float32)
    inv_h = 1.0 / x.shape[-1]

    # One-pass LayerNorm statistics in f32 (eps = 1e-5, matches nn.LayerNorm).
    s1 = jnp.sum(x, axis=-1, keepdims=True)
    s2 = jnp.sum(x * x, axis=-1, keepdims=True)
    mean = s1 * inv_h
    var = jnp.maximum(s2 * inv_h - mean * mean, 0.0)
    xn = (x - mean) * jax.lax.rsqrt(var + 1e-5)

    # MXU matmul in the weight's stored dtype (bf16 by default), f32 accum.
    y = jnp.dot(xn.astype(w_ref.dtype), w_ref[...],
                preferred_element_type=jnp.float32)
    o_ref[...] = (y + b_ref[...]).astype(o_ref.dtype)


def _vmem_capacity_bytes():
    try:
        return int(pltpu.get_tpu_info().vmem_capacity_bytes)
    except Exception:
        return 64 << 20  # conservative (v7x-sized) fallback


def final_layer(x, gamma, beta, weight, bias, *, tile_rows=1024,
                matmul_dtype=jnp.bfloat16):
    """FinalLayer forward.  x: (B, S, H); weight: (O, H) PyTorch convention.

    tile_rows: requested row-block size (sweepable); clamped to VMEM budget.
    matmul_dtype: MXU operand dtype (bf16 default; pass jnp.float32 for exact).
    Returns (B, S, O).
    """
    B, S, H = x.shape
    O = weight.shape[0]
    R = B * S

    # --- Fold gamma into W^T and beta into the bias (one-time XLA prep). ---
    w_t = weight.T.astype(jnp.float32)                        # (H, O)
    w_folded = gamma[:, None].astype(jnp.float32) * w_t
    b_folded = beta.astype(jnp.float32) @ w_t + bias.astype(jnp.float32)

    # --- Lane-dense padded output dim (minimal multiple of 128). ---
    O_pad = _round_up(O, 128)
    if O_pad != O:
        w_folded = jnp.pad(w_folded, ((0, 0), (0, O_pad - O)))
        b_folded = jnp.pad(b_folded, (0, O_pad - O))
    if matmul_dtype is not None:
        w_folded = w_folded.astype(matmul_dtype)
    b2 = b_folded.reshape(1, O_pad)

    # --- Output-dim tiling: whole weight resident while O_pad is modest;
    #     tile at 256 lanes for large heads. ---
    tn = O_pad if O_pad <= 512 else 256
    n_cols = O_pad // tn
    single_buffer_weights = (n_cols == 1)

    # --- Row tile from the per-generation VMEM budget (accounting for the
    #     in-kernel f32 temporaries, not just the pipelined buffers). ---
    xb = jnp.dtype(x.dtype).itemsize
    wb = jnp.dtype(w_folded.dtype).itemsize
    ob = jnp.dtype(x.dtype).itemsize
    vmem_cap = _vmem_capacity_bytes()
    budget = int(vmem_cap * 0.75)          # ~48 MiB on v7x, ~96 MiB on v5e/v6e

    n_w_bufs = 1 if single_buffer_weights else 2
    per_row = (2 * H * xb                  # double-buffered x tile
               + 3 * H * 4                 # f32 upcast / centered / normalized
               + (H * wb if wb != 4 else 0)  # low-precision cast of xn
               + 2 * tn * ob               # double-buffered output tile
               + tn * 4)                   # f32 matmul result
    fixed = n_w_bufs * H * tn * wb + 4 * tn * 4 + (1 << 20)
    tile_cap = max(8, _round_down(max(budget - fixed, 8 * per_row) // per_row, 8))

    row_clamp = R if R <= 8 else max(8, _round_down(R, 8))
    tile = min(_round_up(tile_rows, 8), tile_cap, row_clamp)
    # v7x megacore: keep >= 2 row steps for large inputs so both TCs get work.
    if R > 1024 and pl.cdiv(R, tile) < 2:
        tile = max(8, _round_up(pl.cdiv(R, 2), 8))

    n_rows = pl.cdiv(R, tile)
    grid = (n_rows, n_cols)

    x2 = x.reshape(R, H)                   # no row padding: ragged last block
                                           # is handled by Pallas (clipped
                                           # writes, junk reads are row-local).

    cost = pl.CostEstimate(
        flops=2 * R * H * O_pad,
        transcendentals=R,
        bytes_accessed=(R * H * xb + R * O_pad * ob
                        + H * O_pad * wb + O_pad * 4),
    )

    def _run(use_single_buffer):
        wkw = dict(pipeline_mode=pl.Buffered(1)) if use_single_buffer else {}
        bkw = dict(pipeline_mode=pl.Buffered(1)) if use_single_buffer else {}
        call = pl.pallas_call(
            final_layer_kernel,
            out_shape=jax.ShapeDtypeStruct((R, O_pad), x.dtype),
            grid_spec=pltpu.PrefetchScalarGridSpec(
                num_scalar_prefetch=0,
                grid=grid,
                in_specs=[
                    pl.BlockSpec((tile, H), lambda i, j: (i, 0)),          # x
                    pl.BlockSpec((H, tn), lambda i, j: (0, j), **wkw),     # Wf
                    pl.BlockSpec((1, tn), lambda i, j: (0, j), **bkw),     # bf
                ],
                out_specs=pl.BlockSpec((tile, tn), lambda i, j: (i, j)),
            ),
            compiler_params=pltpu.CompilerParams(
                dimension_semantics=("parallel", "parallel"),
                vmem_limit_bytes=budget,
            ),
            cost_estimate=cost,
        )
        return call(x2, w_folded, b2)

    if single_buffer_weights:
        try:
            out2 = _run(True)
        except Exception:
            out2 = _run(False)   # pipeline_mode unsupported -> default buffers
    else:
        out2 = _run(False)

    if O_pad != O:
        out2 = out2[:, :O]
    return out2.reshape(B, S, O)


def reference(x, gamma, beta, weight, bias):
    mean = jnp.mean(x, axis=-1, keepdims=True)
    var = jnp.mean((x - mean) ** 2, axis=-1, keepdims=True)
    xn = (x - mean) * jax.lax.rsqrt(var + 1e-5) * gamma + beta
    return jnp.einsum("bsh,oh->bso", xn, weight) + bias


if __name__ == "__main__":
    B, S, H, O = 2, 8, 32, 16

    key = jax.random.PRNGKey(0)
    kx, kw, kb, kg, kbt = jax.random.split(key, 5)

    x = jax.random.normal(kx, (B, S, H), dtype=jnp.float32)

    # LayerNorm affine params (non-trivial to exercise the gamma/beta fold).
    gamma = 1.0 + 0.1 * jax.random.normal(kg, (H,), dtype=jnp.float32)
    beta = 0.1 * jax.random.normal(kbt, (H,), dtype=jnp.float32)

    # nn.Linear init: U(-1/sqrt(H), 1/sqrt(H)).
    bound = 1.0 / jnp.sqrt(jnp.float32(H))
    weight = jax.random.uniform(kw, (O, H), dtype=jnp.float32,
                                minval=-bound, maxval=bound)
    bias = jax.random.uniform(kb, (O,), dtype=jnp.float32,
                              minval=-bound, maxval=bound)

    ref = reference(x, gamma, beta, weight, bias)

    # Default (bf16 MXU operands, f32 accumulation).
    out_bf16 = jax.block_until_ready(final_layer(x, gamma, beta, weight, bias))
    assert out_bf16.shape == (B, S, O)
    assert jnp.allclose(out_bf16, ref, atol=3e-2, rtol=3e-2), \
        "mismatch vs reference (bf16 path)"

    # Full-precision path for a tight check.
    out_f32 = jax.block_until_ready(
        final_layer(x, gamma, beta, weight, bias, matmul_dtype=jnp.float32))
    assert jnp.allclose(out_f32, ref, atol=1e-4, rtol=1e-4), \
        "mismatch vs reference (f32 path)"

    print("KERNEL_OK")
</pallas_src>

<mosaic_0001>
module attributes {stable_mosaic.version = 11 : i64} {
  func.func @final_layer_kernel(%arg0: i32, %arg1: i32, %arg2: memref<16x32xf32, #tpu.memory_space<vmem>>, %arg3: memref<32x128xbf16, #tpu.memory_space<vmem>>, %arg4: memref<1x128xf32, #tpu.memory_space<vmem>>, %arg5: memref<16x128xf32, #tpu.memory_space<vmem>>) attributes {dimension_semantics = [#tpu.dimension_semantics<parallel>, #tpu.dimension_semantics<parallel>], iteration_bounds = array<i64: 1, 1>, scalar_prefetch = 0 : i64, scratch_operands = 0 : i64, tpu.core_type = #tpu.core_type<tc>, window_params = [{transform_indices = @transform_0, window_bounds = array<i64: 16, 32>}, {pipeline_mode = #tpu.pipeline_mode<synchronous>, transform_indices = @transform_1, window_bounds = array<i64: 32, 128>}, {pipeline_mode = #tpu.pipeline_mode<synchronous>, transform_indices = @transform_2, window_bounds = array<i64: 1, 128>}, {transform_indices = @transform_3, window_bounds = array<i64: 16, 128>}]} {
    %c0 = arith.constant 0 : index
    %c0_0 = arith.constant 0 : index
    %0 = vector.load %arg2[%c0, %c0_0] : memref<16x32xf32, #tpu.memory_space<vmem>>, vector<16x32xf32>
    %cst = arith.constant dense<0.000000e+00> : vector<16xf32>
    %1 = vector.multi_reduction <add>, %0, %cst [1] : vector<16x32xf32> to vector<16xf32>
    %2 = vector.shape_cast %1 : vector<16xf32> to vector<16x1xf32>
    %3 = arith.mulf %0, %0 : vector<16x32xf32>
    %cst_1 = arith.constant dense<0.000000e+00> : vector<16xf32>
    %4 = vector.multi_reduction <add>, %3, %cst_1 [1] : vector<16x32xf32> to vector<16xf32>
    %5 = vector.shape_cast %4 : vector<16xf32> to vector<16x1xf32>
    %cst_2 = arith.constant 3.125000e-02 : f32
    %6 = vector.broadcast %cst_2 : f32 to vector<16x1xf32>
    %7 = arith.mulf %2, %6 : vector<16x1xf32>
    %cst_3 = arith.constant 3.125000e-02 : f32
    %8 = vector.broadcast %cst_3 : f32 to vector<16x1xf32>
    %9 = arith.mulf %5, %8 : vector<16x1xf32>
    %10 = arith.mulf %7, %7 : vector<16x1xf32>
    %11 = arith.subf %9, %10 : vector<16x1xf32>
    %cst_4 = arith.constant 0.000000e+00 : f32
    %12 = vector.broadcast %cst_4 : f32 to vector<16x1xf32>
    %13 = arith.maximumf %11, %12 : vector<16x1xf32>
    %14 = vector.broadcast %7 : vector<16x1xf32> to vector<16x32xf32>
    %15 = arith.subf %0, %14 : vector<16x32xf32>
    %cst_5 = arith.constant 9.99999974E-6 : f32
    %16 = vector.broadcast %cst_5 : f32 to vector<16x1xf32>
    %17 = arith.addf %13, %16 : vector<16x1xf32>
    %18 = math.rsqrt %17 : vector<16x1xf32>
    %19 = vector.broadcast %18 : vector<16x1xf32> to vector<16x32xf32>
    %20 = arith.mulf %15, %19 : vector<16x32xf32>
    %21 = arith.truncf %20 : vector<16x32xf32> to vector<16x32xbf16>
    %c0_6 = arith.constant 0 : index
    %c0_7 = arith.constant 0 : index
    %22 = vector.load %arg3[%c0_6, %c0_7] : memref<32x128xbf16, #tpu.memory_space<vmem>>, vector<32x128xbf16>
    %cst_8 = arith.constant dense<0.000000e+00> : vector<16x128xf32>
    %23 = tpu.matmul %21, %22, %cst_8 {dimension_numbers = #tpu.dot_dimension_numbers<[1], [0], [0], [1], [0, 0, 1, 1], [], []>} : vector<16x32xbf16>, vector<32x128xbf16>, vector<16x128xf32> -> vector<16x128xf32>
    %c0_9 = arith.constant 0 : index
    %c0_10 = arith.constant 0 : index
    %24 = vector.load %arg4[%c0_9, %c0_10] : memref<1x128xf32, #tpu.memory_space<vmem>>, vector<1x128xf32>
    %25 = vector.broadcast %24 : vector<1x128xf32> to vector<16x128xf32>
    %26 = arith.addf %23, %25 : vector<16x128xf32>
    %c0_11 = arith.constant 0 : index
    %c0_12 = arith.constant 0 : index
    %27 = vector.load %arg5[%c0_11, %c0_12] : memref<16x128xf32, #tpu.memory_space<vmem>>, vector<16x128xf32>
    tpu.vector_store %arg5[%c0_11, %c0_12], %26 {strides = array<i32>} : memref<16x128xf32, #tpu.memory_space<vmem>>, vector<16x128xf32>,
    return
  }
  func.func @transform_0(%arg0: i32, %arg1: i32) -> (i32, i32) {
    %c0_i32 = arith.constant 0 : i32
    %c0_i32_0 = arith.constant 0 : i32
    return %arg0, %c0_i32 : i32, i32
  }
  func.func @transform_1(%arg0: i32, %arg1: i32) -> (i32, i32) {
    %c0_i32 = arith.constant 0 : i32
    %c0_i32_0 = arith.constant 0 : i32
    return %c0_i32, %arg1 : i32, i32
  }
  func.func @transform_2(%arg0: i32, %arg1: i32) -> (i32, i32) {
    %c0_i32 = arith.constant 0 : i32
    %c0_i32_0 = arith.constant 0 : i32
    return %c0_i32, %arg1 : i32, i32
  }
  func.func @transform_3(%arg0: i32, %arg1: i32) -> (i32, i32) {
    %c0_i32 = arith.constant 0 : i32
    return %arg0, %arg1 : i32, i32
  }
}

module attributes {stable_mosaic.version = 11 : i64} {
  func.func @final_layer_kernel(%arg0: i32, %arg1: i32, %arg2: memref<16x32xf32, #tpu.memory_space<vmem>>, %arg3: memref<32x128xbf16, #tpu.memory_space<vmem>>, %arg4: memref<1x128xf32, #tpu.memory_space<vmem>>, %arg5: memref<16x128xf32, #tpu.memory_space<vmem>>) attributes {dimension_semantics = [#tpu.dimension_semantics<parallel>, #tpu.dimension_semantics<parallel>], iteration_bounds = array<i64: 1, 1>, scalar_prefetch = 0 : i64, scratch_operands = 0 : i64, tpu.core_type = #tpu.core_type<tc>, window_params = [{transform_indices = @transform_0, window_bounds = array<i64: 16, 32>}, {transform_indices = @transform_1, window_bounds = array<i64: 32, 128>}, {transform_indices = @transform_2, window_bounds = array<i64: 1, 128>}, {transform_indices = @transform_3, window_bounds = array<i64: 16, 128>}]} {
    %c0 = arith.constant 0 : index
    %c0_0 = arith.constant 0 : index
    %0 = vector.load %arg2[%c0, %c0_0] : memref<16x32xf32, #tpu.memory_space<vmem>>, vector<16x32xf32>
    %cst = arith.constant dense<0.000000e+00> : vector<16xf32>
    %1 = vector.multi_reduction <add>, %0, %cst [1] : vector<16x32xf32> to vector<16xf32>
    %2 = vector.shape_cast %1 : vector<16xf32> to vector<16x1xf32>
    %3 = arith.mulf %0, %0 : vector<16x32xf32>
    %cst_1 = arith.constant dense<0.000000e+00> : vector<16xf32>
    %4 = vector.multi_reduction <add>, %3, %cst_1 [1] : vector<16x32xf32> to vector<16xf32>
    %5 = vector.shape_cast %4 : vector<16xf32> to vector<16x1xf32>
    %cst_2 = arith.constant 3.125000e-02 : f32
    %6 = vector.broadcast %cst_2 : f32 to vector<16x1xf32>
    %7 = arith.mulf %2, %6 : vector<16x1xf32>
    %cst_3 = arith.constant 3.125000e-02 : f32
    %8 = vector.broadcast %cst_3 : f32 to vector<16x1xf32>
    %9 = arith.mulf %5, %8 : vector<16x1xf32>
    %10 = arith.mulf %7, %7 : vector<16x1xf32>
    %11 = arith.subf %9, %10 : vector<16x1xf32>
    %cst_4 = arith.constant 0.000000e+00 : f32
    %12 = vector.broadcast %cst_4 : f32 to vector<16x1xf32>
    %13 = arith.maximumf %11, %12 : vector<16x1xf32>
    %14 = vector.broadcast %7 : vector<16x1xf32> to vector<16x32xf32>
    %15 = arith.subf %0, %14 : vector<16x32xf32>
    %cst_5 = arith.constant 9.99999974E-6 : f32
    %16 = vector.broadcast %cst_5 : f32 to vector<16x1xf32>
    %17 = arith.addf %13, %16 : vector<16x1xf32>
    %18 = math.rsqrt %17 : vector<16x1xf32>
    %19 = vector.broadcast %18 : vector<16x1xf32> to vector<16x32xf32>
    %20 = arith.mulf %15, %19 : vector<16x32xf32>
    %21 = arith.truncf %20 : vector<16x32xf32> to vector<16x32xbf16>
    %c0_6 = arith.constant 0 : index
    %c0_7 = arith.constant 0 : index
    %22 = vector.load %arg3[%c0_6, %c0_7] : memref<32x128xbf16, #tpu.memory_space<vmem>>, vector<32x128xbf16>
    %cst_8 = arith.constant dense<0.000000e+00> : vector<16x128xf32>
    %23 = tpu.matmul %21, %22, %cst_8 {dimension_numbers = #tpu.dot_dimension_numbers<[1], [0], [0], [1], [0, 0, 1, 1], [], []>} : vector<16x32xbf16>, vector<32x128xbf16>, vector<16x128xf32> -> vector<16x128xf32>
    %c0_9 = arith.constant 0 : index
    %c0_10 = arith.constant 0 : index
    %24 = vector.load %arg4[%c0_9, %c0_10] : memref<1x128xf32, #tpu.memory_space<vmem>>, vector<1x128xf32>
    %25 = vector.broadcast %24 : vector<1x128xf32> to vector<16x128xf32>
    %26 = arith.addf %23, %25 : vector<16x128xf32>
    %c0_11 = arith.constant 0 : index
    %c0_12 = arith.constant 0 : index
    %27 = vector.load %arg5[%c0_11, %c0_12] : memref<16x128xf32, #tpu.memory_space<vmem>>, vector<16x128xf32>
    tpu.vector_store %arg5[%c0_11, %c0_12], %26 {strides = array<i32>} : memref<16x128xf32, #tpu.memory_space<vmem>>, vector<16x128xf32>,
    return
  }
  func.func @transform_0(%arg0: i32, %arg1: i32) -> (i32, i32) {
    %c0_i32 = arith.constant 0 : i32
    %c0_i32_0 = arith.constant 0 : i32
    return %arg0, %c0_i32 : i32, i32
  }
  func.func @transform_1(%arg0: i32, %arg1: i32) -> (i32, i32) {
    %c0_i32 = arith.constant 0 : i32
    %c0_i32_0 = arith.constant 0 : i32
    return %c0_i32, %arg1 : i32, i32
  }
  func.func @transform_2(%arg0: i32, %arg1: i32) -> (i32, i32) {
    %c0_i32 = arith.constant 0 : i32
    %c0_i32_0 = arith.constant 0 : i32
    return %c0_i32, %arg1 : i32, i32
  }
  func.func @transform_3(%arg0: i32, %arg1: i32) -> (i32, i32) {
    %c0_i32 = arith.constant 0 : i32
    return %arg0, %arg1 : i32, i32
  }
}

</mosaic_0001>

<bundles_post_ra>
// kernel: tpu_custom_call.1
= control target key start
LH: loop header
LB: loop body
LE: loop exit
PB: predicated region body
PF: predicated region fallthrough
CT: control target
= control target key end

     0   :  { %8 = vsyncpa [#allocation3], 0  ;;  %s315_s0 = inlined_call_operand.hbm [shape: f32[16,32], index: 0, kind: input, shape index: {}]   ;;  %s316_s1 = inlined_call_operand.hbm [shape: bf16[32,128], index: 1, kind: input, shape index: {}]   ;;  %s317_s2 = inlined_call_operand.vmem [shape: f32[1,128], index: 2, kind: input, shape index: {}]   ;;  %s318_s3 = inlined_call_operand.hbm [shape: f32[16,128], index: 3, kind: output, shape index: {}]  }
   0x1   :  { %9 = vsyncpa [#allocation6], 0 }
   0x2   :  { %10 = vsyncpa [#allocation4], 0  ;;  %s263_s12 = smov [#allocation2]  }
   0x3   :  { %s16_s13 = sshll.u32 %s263_s12, 4  ;;  %s17_s13 = int_to_ptr.vmem [resolvable:$true] %s16_s13 }
   0x4   :  { %s205_s14 = scalar_lea.vmem %s17_s13, 256  ;;  %p210_p1 = scmp.lt.s32.totalorder %s17_s13, %s17_s13 }
   0x5   :  { %p206_p0 = scmp.ne.s32.totalorder %s17_s13, %s205_s14  ;;  %p211_p2 = scmp.lt.s32.totalorder %s205_s14, %s205_s14 }
   0x7   :  { %p212_p3 = por %p211_p2, %p210_p1 }
   0x9   :  { %p213_p4 = pnand %p212_p3, %p206_p0 }
   0xb   :  { %216 = shalt.err (!%p213_p4)
}
   0xc   :  { %s264_s15 = smov 128   ;;  %s265_s16 = smov 8  }
   0xd   :  { %22 = dma.hbm_to_vmem [thread:$0]  %s315_s0, 256, %s17_s13, [#allocation3], %s264_s15, %s264_s15, %s265_s16  }
   0xe   :  { %s266_s19 = smov [#allocation5]  }
   0xf   :  { %s28_s20 = sshll.u32 %s266_s19, 4  ;;  %s29_s20 = int_to_ptr.vmem [resolvable:$true] %s28_s20 }
  0x10   :  { %s225_s21 = scalar_lea.vmem %s29_s20, 256  ;;  %p230_p6 = scmp.lt.s32.totalorder %s29_s20, %s29_s20 }
  0x11   :  { %p226_p5 = scmp.ne.s32.totalorder %s29_s20, %s225_s21  ;;  %p231_p7 = scmp.lt.s32.totalorder %s225_s21, %s225_s21 }
  0x13   :  { %p232_p8 = por %p231_p7, %p230_p6 }
  0x15   :  { %p233_p9 = pnand %p232_p8, %p226_p5 }
  0x17   :  { %236 = shalt.err (!%p233_p9)
}
  0x18   :  { %s267_s22 = smov 64   ;;  %s268_s23 = smov 4  }
  0x19   :  { %34 = dma.hbm_to_vmem [thread:$0]  %s316_s1, 256, %s29_s20, [#allocation6], %s267_s22, %s267_s22, %s268_s23  }
  0x1a   :  { %257 = dma.done.wait [#allocation3], 256  }
  0x1b   :  { %258 = vsyncadd [#allocation3], 4294967040 }
  0x1c   :  { %259 = dma.done.wait [#allocation6], 256  }
  0x1d   :  { %260 = vsyncadd [#allocation6], 4294967040  ;;  %vm46_vm0 = vcmask 261120   ;;  %v44_v0 = vld [vmem:[#allocation2] sm:$0xff]  ;;  %v45_v1 = vld [vmem:[#allocation2 + $0x8] sm:$0xff]  ;;  %v269_v9 = vmov 0.0  }
  0x1e   :  { %v47_v2 = vsel %vm46_vm0, %v44_v0, 0.0  ;;  %v53_v3 = vmul.f32 %v44_v0, %v44_v0  ;;  %v54_v4 = vmul.f32 %v45_v1, %v45_v1  ;;  %v50_v6 = vsel %vm46_vm0, %v45_v1, 0.0  ;;  %v191_v8 = vld [vmem:[#allocation5 + $0x8] sm:$0xff]   ;;  %174 = vmatprep.subr.bf16.mxu0 %v269_v9  ;;  %v192_v10 = vld [vmem:[#allocation5] sm:$0xff]   ;;  %v167_v34 = vld [vmem:[%s317_s2] ss:$0 sm:$0xff] }
  0x1f   :  { %48 = vadd.xlane.f32.xlu0 %v47_v2  ;;  %vm270_vm1 = vmmov 0   ;;  %175 = vmatpush3.bf16.msra.mxu0 %v191_v8  ;;  %s271_s26 = smov [#allocation7]  }
  0x20   :  { %v55_v5 = vsel %vm46_vm0, %v53_v3, 0.0  ;;  %v58_v7 = vsel %vm46_vm0, %v54_v4, 0.0  ;;  %178 = vmatprep.mubr.msk.bf16.mxu0 %vm270_vm1, %v269_v9  ;;  %176 = vmatprep.subr.bf16.mxu0 %v269_v9  ;;  %s154_s27 = sshll.u32 %s271_s26, 4  ;;  %s155_s27 = int_to_ptr.vmem [resolvable:$true] %s154_s27 }
  0x21   :  { %56 = vadd.xlane.f32.xlu1 %v55_v5  ;;  %s237_s28 = scalar_lea.vmem %s155_s27, 256  ;;  %p242_p11 = scmp.lt.s32.totalorder %s155_s27, %s155_s27 }
  0x22   :  { %p238_p10 = scmp.ne.s32.totalorder %s155_s27, %s237_s28  ;;  %p243_p12 = scmp.lt.s32.totalorder %s237_s28, %s237_s28 }
  0x23   :  { %51 = vadd.xlane.f32.xlu0 %v50_v6  ;;  %177 = vmatpush3.bf16.msra.mxu0 %v192_v10 }
  0x24   :  { %p244_p13 = por %p243_p12, %p242_p11 }
  0x25   :  { %59 = vadd.xlane.f32.xlu1 %v58_v7 }
  0x26   :  { %p245_p0 = pnand %p244_p13, %p238_p10 }
  0xa8   :  { %v49_v11 = vpop.xlane.xlu0 %48 }
  0xa9   :  { %v61_v12 = vmul.f32 0.03125, %v49_v11 }
  0xaa   :  { %v57_v13 = vpop.xlane.xlu1 %56 }
  0xab   :  { %v65_v14 = vmul.f32 %v61_v12, %v61_v12  ;;  %v63_v15 = vmul.f32 0.03125, %v57_v13  ;;  %v71_v28 = vsub.f32 %v44_v0, %v61_v12 }
  0xac   :  { %v52_v16 = vpop.xlane.xlu0 %51 }
  0xad   :  { %v67_v17 = vsub.f32 %v63_v15, %v65_v14  ;;  %v62_v18 = vmul.f32 0.03125, %v52_v16 }
  0xae   :  { %v60_v19 = vpop.xlane.xlu1 %59 }
  0xaf   :  { %v69_v20 = vmax.f32 %v67_v17, 0.0  ;;  %v66_v21 = vmul.f32 %v62_v18, %v62_v18  ;;  %v64_v22 = vmul.f32 0.03125, %v60_v19  ;;  %v72_v29 = vsub.f32 %v45_v1, %v62_v18 }
  0xb1   :  { %v73_v23 = vadd.f32 1e-05, %v69_v20  ;;  %v68_v24 = vsub.f32 %v64_v22, %v66_v21 }
  0xb3   :  { %v70_v25 = vmax.f32 %v68_v24, 0.0  ;;  %193 = vrsqrt.f32 %v73_v23 }
  0xb5   :  { %v74_v26 = vadd.f32 1e-05, %v70_v25 }
  0xb7   :  { %195 = vrsqrt.f32 %v74_v26 }
  0xc0   :  { %v194_v27 = vpop.eup %193 }
  0xc1   :  { %v77_v31 = vmul.f32 %v194_v27, %v71_v28 }
  0xc4   :  { %v196_v30 = vpop.eup %195 }
  0xc5   :  { %v78_v32 = vmul.f32 %v196_v30, %v72_v29 }
  0xc7   :  { %v79_v33 = vpack.c.bf16 %v78_v32, %v77_v31 }
  0xc9   :  { %179 = vmatmul.mubr.msk.bf16.vlgmr.msra.gmra.mxu0 %vm46_vm0, %v79_v33 }
 0x189   :  { %v140_v35 = vpop.f32.mrf.mxu0 }
 0x18a   :  { %v141_v36 = vadd.f32 %v167_v34, %v140_v35 }
 0x18b   :  { %v180_v37 = vpop.f32.mrf.mxu0 }
 0x18c   :  { %147 = vst [vmem:[#allocation7] sm:$0xff] %v141_v36 }
 0x18d   :  { %v143_v38 = vpop.f32.mrf.mxu0 }
 0x18e   :  { %v144_v39 = vadd.f32 %v167_v34, %v143_v38 }
 0x18f   :  { %v181_v40 = vpop.f32.mrf.mxu0 }
 0x190   :  { %148 = vst [vmem:[#allocation7 + $0x8] sm:$0xff] %v144_v39 }
 0x191   :  { %248 = shalt.err (!%p245_p0)
}
 0x192   :  { %160 = dma.vmem_to_hbm [thread:$0]  %s155_s27, 256, %s318_s3, [#allocation4], %s264_s15, %s264_s15, %s265_s16  }
 0x193   :  { %261 = dma.done.wait [#allocation4], 256  }
 0x194   :  { %262 = vsyncadd [#allocation4], 4294967040 }
 0x195   :  { %164 = vsyncpa [#allocation3], 1 }
 0x196   :  { %165 = vsyncpa [#allocation6], 1 }
 0x197   :  { %166 = vsyncpa [#allocation4], 1 }

// kernel: tpu_custom_call.1
= control target key start
LH: loop header
LB: loop body
LE: loop exit
PB: predicated region body
PF: predicated region fallthrough
CT: control target
= control target key end

     0   :  { %8 = vsyncpa [#allocation3], 0  ;;  %s315_s0 = inlined_call_operand.hbm [shape: f32[16,32], index: 0, kind: input, shape index: {}]   ;;  %s316_s1 = inlined_call_operand.hbm [shape: bf16[32,128], index: 1, kind: input, shape index: {}]   ;;  %s317_s2 = inlined_call_operand.vmem [shape: f32[1,128], index: 2, kind: input, shape index: {}]   ;;  %s318_s3 = inlined_call_operand.hbm [shape: f32[16,128], index: 3, kind: output, shape index: {}]  }
   0x1   :  { %9 = vsyncpa [#allocation6], 0 }
   0x2   :  { %10 = vsyncpa [#allocation4], 0  ;;  %s263_s12 = smov [#allocation2]  }
   0x3   :  { %s16_s13 = sshll.u32 %s263_s12, 4  ;;  %s17_s13 = int_to_ptr.vmem [resolvable:$true] %s16_s13 }
   0x4   :  { %s205_s14 = scalar_lea.vmem %s17_s13, 256  ;;  %p210_p1 = scmp.lt.s32.totalorder %s17_s13, %s17_s13 }
   0x5   :  { %p206_p0 = scmp.ne.s32.totalorder %s17_s13, %s205_s14  ;;  %p211_p2 = scmp.lt.s32.totalorder %s205_s14, %s205_s14 }
   0x7   :  { %p212_p3 = por %p211_p2, %p210_p1 }
   0x9   :  { %p213_p4 = pnand %p212_p3, %p206_p0 }
   0xb   :  { %216 = shalt.err (!%p213_p4)
}
   0xc   :  { %s264_s15 = smov 128   ;;  %s265_s16 = smov 8  }
   0xd   :  { %22 = dma.hbm_to_vmem [thread:$0]  %s315_s0, 256, %s17_s13, [#allocation3], %s264_s15, %s264_s15, %s265_s16  }
   0xe   :  { %s266_s19 = smov [#allocation5]  }
   0xf   :  { %s28_s20 = sshll.u32 %s266_s19, 4  ;;  %s29_s20 = int_to_ptr.vmem [resolvable:$true] %s28_s20 }
  0x10   :  { %s225_s21 = scalar_lea.vmem %s29_s20, 256  ;;  %p230_p6 = scmp.lt.s32.totalorder %s29_s20, %s29_s20 }
  0x11   :  { %p226_p5 = scmp.ne.s32.totalorder %s29_s20, %s225_s21  ;;  %p231_p7 = scmp.lt.s32.totalorder %s225_s21, %s225_s21 }
  0x13   :  { %p232_p8 = por %p231_p7, %p230_p6 }
  0x15   :  { %p233_p9 = pnand %p232_p8, %p226_p5 }
  0x17   :  { %236 = shalt.err (!%p233_p9)
}
  0x18   :  { %s267_s22 = smov 64   ;;  %s268_s23 = smov 4  }
  0x19   :  { %34 = dma.hbm_to_vmem [thread:$0]  %s316_s1, 256, %s29_s20, [#allocation6], %s267_s22, %s267_s22, %s268_s23  }
  0x1a   :  { %257 = dma.done.wait [#allocation3], 256  }
  0x1b   :  { %258 = vsyncadd [#allocation3], 4294967040 }
  0x1c   :  { %259 = dma.done.wait [#allocation6], 256  }
  0x1d   :  { %260 = vsyncadd [#allocation6], 4294967040  ;;  %vm46_vm0 = vcmask 261120   ;;  %v44_v0 = vld [vmem:[#allocation2] sm:$0xff]  ;;  %v45_v1 = vld [vmem:[#allocation2 + $0x8] sm:$0xff]  ;;  %v269_v9 = vmov 0.0  }
  0x1e   :  { %v47_v2 = vsel %vm46_vm0, %v44_v0, 0.0  ;;  %v53_v3 = vmul.f32 %v44_v0, %v44_v0  ;;  %v54_v4 = vmul.f32 %v45_v1, %v45_v1  ;;  %v50_v6 = vsel %vm46_vm0, %v45_v1, 0.0  ;;  %v191_v8 = vld [vmem:[#allocation5 + $0x8] sm:$0xff]   ;;  %174 = vmatprep.subr.bf16.mxu0 %v269_v9  ;;  %v192_v10 = vld [vmem:[#allocation5] sm:$0xff]   ;;  %v167_v34 = vld [vmem:[%s317_s2] ss:$0 sm:$0xff] }
  0x1f   :  { %48 = vadd.xlane.f32.xlu0 %v47_v2  ;;  %vm270_vm1 = vmmov 0   ;;  %175 = vmatpush3.bf16.msra.mxu0 %v191_v8  ;;  %s271_s26 = smov [#allocation7]  }
  0x20   :  { %v55_v5 = vsel %vm46_vm0, %v53_v3, 0.0  ;;  %v58_v7 = vsel %vm46_vm0, %v54_v4, 0.0  ;;  %178 = vmatprep.mubr.msk.bf16.mxu0 %vm270_vm1, %v269_v9  ;;  %176 = vmatprep.subr.bf16.mxu0 %v269_v9  ;;  %s154_s27 = sshll.u32 %s271_s26, 4  ;;  %s155_s27 = int_to_ptr.vmem [resolvable:$true] %s154_s27 }
  0x21   :  { %56 = vadd.xlane.f32.xlu1 %v55_v5  ;;  %s237_s28 = scalar_lea.vmem %s155_s27, 256  ;;  %p242_p11 = scmp.lt.s32.totalorder %s155_s27, %s155_s27 }
  0x22   :  { %p238_p10 = scmp.ne.s32.totalorder %s155_s27, %s237_s28  ;;  %p243_p12 = scmp.lt.s32.totalorder %s237_s28, %s237_s28 }
  0x23   :  { %51 = vadd.xlane.f32.xlu0 %v50_v6  ;;  %177 = vmatpush3.bf16.msra.mxu0 %v192_v10 }
  0x24   :  { %p244_p13 = por %p243_p12, %p242_p11 }
  0x25   :  { %59 = vadd.xlane.f32.xlu1 %v58_v7 }
  0x26   :  { %p245_p0 = pnand %p244_p13, %p238_p10 }
  0xa8   :  { %v49_v11 = vpop.xlane.xlu0 %48 }
  0xa9   :  { %v61_v12 = vmul.f32 0.03125, %v49_v11 }
  0xaa   :  { %v57_v13 = vpop.xlane.xlu1 %56 }
  0xab   :  { %v65_v14 = vmul.f32 %v61_v12, %v61_v12  ;;  %v63_v15 = vmul.f32 0.03125, %v57_v13  ;;  %v71_v28 = vsub.f32 %v44_v0, %v61_v12 }
  0xac   :  { %v52_v16 = vpop.xlane.xlu0 %51 }
  0xad   :  { %v67_v17 = vsub.f32 %v63_v15, %v65_v14  ;;  %v62_v18 = vmul.f32 0.03125, %v52_v16 }
  0xae   :  { %v60_v19 = vpop.xlane.xlu1 %59 }
  0xaf   :  { %v69_v20 = vmax.f32 %v67_v17, 0.0  ;;  %v66_v21 = vmul.f32 %v62_v18, %v62_v18  ;;  %v64_v22 = vmul.f32 0.03125, %v60_v19  ;;  %v72_v29 = vsub.f32 %v45_v1, %v62_v18 }
  0xb1   :  { %v73_v23 = vadd.f32 1e-05, %v69_v20  ;;  %v68_v24 = vsub.f32 %v64_v22, %v66_v21 }
  0xb3   :  { %v70_v25 = vmax.f32 %v68_v24, 0.0  ;;  %193 = vrsqrt.f32 %v73_v23 }
  0xb5   :  { %v74_v26 = vadd.f32 1e-05, %v70_v25 }
  0xb7   :  { %195 = vrsqrt.f32 %v74_v26 }
  0xc0   :  { %v194_v27 = vpop.eup %193 }
  0xc1   :  { %v77_v31 = vmul.f32 %v194_v27, %v71_v28 }
  0xc4   :  { %v196_v30 = vpop.eup %195 }
  0xc5   :  { %v78_v32 = vmul.f32 %v196_v30, %v72_v29 }
  0xc7   :  { %v79_v33 = vpack.c.bf16 %v78_v32, %v77_v31 }
  0xc9   :  { %179 = vmatmul.mubr.msk.bf16.vlgmr.msra.gmra.mxu0 %vm46_vm0, %v79_v33 }
 0x189   :  { %v140_v35 = vpop.f32.mrf.mxu0 }
 0x18a   :  { %v141_v36 = vadd.f32 %v167_v34, %v140_v35 }
 0x18b   :  { %v180_v37 = vpop.f32.mrf.mxu0 }
 0x18c   :  { %147 = vst [vmem:[#allocation7] sm:$0xff] %v141_v36 }
 0x18d   :  { %v143_v38 = vpop.f32.mrf.mxu0 }
 0x18e   :  { %v144_v39 = vadd.f32 %v167_v34, %v143_v38 }
 0x18f   :  { %v181_v40 = vpop.f32.mrf.mxu0 }
 0x190   :  { %148 = vst [vmem:[#allocation7 + $0x8] sm:$0xff] %v144_v39 }
 0x191   :  { %248 = shalt.err (!%p245_p0)
}
 0x192   :  { %160 = dma.vmem_to_hbm [thread:$0]  %s155_s27, 256, %s318_s3, [#allocation4], %s264_s15, %s264_s15, %s265_s16  }
 0x193   :  { %261 = dma.done.wait [#allocation4], 256  }
 0x194   :  { %262 = vsyncadd [#allocation4], 4294967040 }
 0x195   :  { %164 = vsyncpa [#allocation3], 1 }
 0x196   :  { %165 = vsyncpa [#allocation6], 1 }
 0x197   :  { %166 = vsyncpa [#allocation4], 1 }

</bundles_post_ra>
